<compile_context>
chip_gen: v6e
topology: v6e:2x2x1
jax: 0.10.0
libtpu: 0.0.40
codegen_flags: <defaults>
</compile_context>

<pallas_src>
import functools

import jax
import jax.numpy as jnp
from jax.experimental import pallas as pl
from jax.experimental.pallas import tpu as pltpu


def _round_up(x, m):
    return ((x + m - 1) // m) * m


def _pad2(x, rows, cols):
    return jnp.pad(x, ((0, rows - x.shape[0]), (0, cols - x.shape[1])))


# ----------------------------------------------------------------------------
# Fused kernel
# ----------------------------------------------------------------------------

def _gpcanet_kernel(a_ref, x_ref, pool_ref, cw_ref, cb_ref,
                    w1_ref, b1_ref, w2_ref, b2_ref,
                    o_ref,
                    h_ref, c2x_ref, inv0_ref, inv1_ref, acc_ref,
                    *, c2, n_powers, n_real, n_class, tm, tk):
    l = pl.program_id(0)          # layer
    p = pl.program_id(1)          # power iteration
    i = pl.program_id(2)          # A row tile
    j = pl.program_id(3)          # A col tile (reduction)
    nl = pl.num_programs(0)
    ni = pl.num_programs(2)
    nj = pl.num_programs(3)

    n_pad, f_pad = h_ref.shape

    # ---- layer start: center h over the real nodes, hoist c2*x_c, seed invphi.
    @pl.when((p == 0) & (i == 0) & (j == 0))
    def _layer_start():
        @pl.when(l == 0)
        def _():
            h_ref[...] = x_ref[...]
        h = h_ref[...]
        # padded rows of h are always zero -> sum/n_real == mean over real rows
        mean = jnp.sum(h, axis=0, keepdims=True) * (1.0 / n_real)
        xc = h - mean
        inv0_ref[...] = xc          # power iter p reads slot p%2; p=0 -> slot 0
        c2x_ref[...] = c2 * xc      # hoisted loop-invariant term

    # ---- one (i, j) tile of the current power iteration:
    #        invphi_new[i] = sum_j (c1*A)[i, j] @ invphi_old[j] + c2x[i]
    a_tile = a_ref[...]                               # (tm, tk) bf16, c1 folded in
    row0 = pl.multiple_of(i * tm, tm)
    col0 = pl.multiple_of(j * tk, tk)

    def _power_step(src_ref, dst_ref):
        @pl.when(j == 0)
        def _():
            acc_ref[...] = jnp.zeros_like(acc_ref)
        inv_j = src_ref[pl.ds(col0, tk), :].astype(jnp.bfloat16)
        acc_ref[...] += jnp.dot(a_tile, inv_j,
                                preferred_element_type=jnp.float32)

        @pl.when(j == nj - 1)
        def _():
            dst_ref[pl.ds(row0, tm), :] = (acc_ref[...]
                                           + c2x_ref[pl.ds(row0, tm), :])

    parity = p % 2                 # ping-pong between the two invphi buffers

    @pl.when(parity == 0)
    def _():
        _power_step(inv0_ref, inv1_ref)

    @pl.when(parity == 1)
    def _():
        _power_step(inv1_ref, inv0_ref)

    is_layer_end = (p == n_powers - 1) & (i == ni - 1) & (j == nj - 1)

    # ---- layer end: linear projection + bias + ReLU (freeze_status=False).
    #      Re-mask padded rows so the next layer's centering stays exact.
    @pl.when(is_layer_end)
    def _layer_end():
        inv_fin_ref = inv1_ref if (n_powers % 2 == 1) else inv0_ref
        hn = jnp.dot(inv_fin_ref[...], cw_ref[0],
                     preferred_element_type=jnp.float32) + cb_ref[0]
        hn = jnp.maximum(hn, 0.0)
        row_ids = jax.lax.broadcasted_iota(jnp.int32, (n_pad, 1), 0)
        h_ref[...] = jnp.where(row_ids < n_real, hn, 0.0)

    # ---- readout head fused into the very last grid step:
    #      global_mean_pool -> Linear -> ReLU -> Dropout(identity) -> Linear
    #      -> log_softmax (padded class columns masked out).
    @pl.when(is_layer_end & (l == nl - 1))
    def _head():
        pooled = jnp.dot(pool_ref[...], h_ref[...],
                         preferred_element_type=jnp.float32)
        hh = jnp.dot(pooled, w1_ref[...],
                     preferred_element_type=jnp.float32) + b1_ref[...]
        hh = jnp.maximum(hh, 0.0)
        logits = jnp.dot(hh, w2_ref[...],
                         preferred_element_type=jnp.float32) + b2_ref[...]
        col_ids = jax.lax.broadcasted_iota(jnp.int32, logits.shape, 1)
        logits = jnp.where(col_ids < n_class, logits, -1e30)
        m = jnp.max(logits, axis=-1, keepdims=True)
        z = logits - m
        lse = jnp.log(jnp.sum(jnp.exp(z), axis=-1, keepdims=True))
        o_ref[...] = (z - lse).astype(o_ref.dtype)


# ----------------------------------------------------------------------------
# Wrapper
# ----------------------------------------------------------------------------

def _choose_tiles(n):
    """Pick (n_pad, tm, tk) for the adjacency.

    If A fits comfortably in VMEM (budgeted for v7x's 64 MiB physical, the
    smallest of v5e/v6e/v7x, including 2x double-buffer), use a single block:
    constant block index -> Pallas keeps A resident across all layers and
    power iterations.  Otherwise stream (tm, tk) = (256, 1024) tiles
    (tk >= 512 keeps the MXU reduction dimension full)."""
    if n <= 2048:                       # 2048^2 bf16 * 2 buffers = 16 MiB
        n_pad = _round_up(n, 16)
        return n_pad, n_pad, n_pad
    tm, tk = 256, 1024
    n_pad = _round_up(n, 1024)          # lcm(tm, tk)
    return n_pad, tm, tk


def gpcanet_forward(a, x, pool_mat, params, *, alpha, n_powers):
    """Full GPCANet forward (freeze_status=False -> ReLU after each conv)."""
    n, nfeat = x.shape
    g = pool_mat.shape[0]
    nlayer = len(params["convs"])
    nhid = params["convs"][0][0].shape[1]
    nclass = params["mlp_w2"].shape[1]

    f_pad = _round_up(max(nfeat, nhid, 128), 128)     # lane-dense features
    c_pad = _round_up(max(nclass, 128), 128)          # lane-dense logits
    n_pad, tm, tk = _choose_tiles(n)

    c1 = alpha / (1.0 + alpha)
    c2 = 1.0 / (1.0 + alpha)

    # One-time boundary prep: fold c1 into A, cast to bf16, zero-pad everything.
    a_s = _pad2(c1 * a, n_pad, n_pad).astype(jnp.bfloat16)
    x_p = _pad2(x.astype(jnp.float32), n_pad, f_pad)
    pool_p = _pad2(pool_mat.astype(jnp.float32), g, n_pad)

    cw = jnp.stack([_pad2(w, f_pad, f_pad) for (w, _) in params["convs"]])
    cb = jnp.stack([_pad2(b, 1, f_pad) for (_, b) in params["convs"]])
    w1 = _pad2(params["mlp_w1"], f_pad, f_pad)
    b1 = _pad2(params["mlp_b1"], 1, f_pad)
    w2 = _pad2(params["mlp_w2"], f_pad, c_pad)
    b2 = _pad2(params["mlp_b2"], 1, c_pad)

    grid = (nlayer, int(n_powers), n_pad // tm, n_pad // tk)

    kernel = functools.partial(
        _gpcanet_kernel, c2=float(c2), n_powers=int(n_powers),
        n_real=int(n), n_class=int(nclass), tm=tm, tk=tk)

    # Explicit VMEM budget: chosen tiles + 2x double buffering + scratch.
    est = (2 * tm * tk * 2                               # A tiles (bf16)
           + 2 * n_pad * f_pad * 4                       # x
           + 2 * g * n_pad * 4                           # pool matrix
           + 2 * (f_pad * f_pad + f_pad) * 4             # conv W / b blocks
           + 2 * (f_pad * f_pad + f_pad
                  + f_pad * c_pad + c_pad) * 4           # MLP weights
           + 2 * g * c_pad * 4                           # output block
           + (4 * n_pad * f_pad + tm * f_pad) * 4)       # scratch
    vmem_limit = min(max(int(1.5 * est) + (4 << 20), 32 << 20), 64 << 20)

    out = pl.pallas_call(
        kernel,
        out_shape=jax.ShapeDtypeStruct((g, c_pad), jnp.float32),
        grid_spec=pltpu.PrefetchScalarGridSpec(
            num_scalar_prefetch=0,
            grid=grid,
            in_specs=[
                # A: streamed tiles; constant index when it fits (resident).
                pl.BlockSpec((tm, tk), lambda l, p, i, j: (i, j)),
                # Node features (read once, layer 0 only).
                pl.BlockSpec((n_pad, f_pad), lambda l, p, i, j: (0, 0)),
                # Mean-pool matrix.
                pl.BlockSpec((g, n_pad), lambda l, p, i, j: (0, 0)),
                # Per-layer conv weight / bias (re-fetched only when l changes).
                pl.BlockSpec((1, f_pad, f_pad), lambda l, p, i, j: (l, 0, 0)),
                pl.BlockSpec((1, 1, f_pad), lambda l, p, i, j: (l, 0, 0)),
                # Readout MLP.
                pl.BlockSpec((f_pad, f_pad), lambda l, p, i, j: (0, 0)),
                pl.BlockSpec((1, f_pad), lambda l, p, i, j: (0, 0)),
                pl.BlockSpec((f_pad, c_pad), lambda l, p, i, j: (0, 0)),
                pl.BlockSpec((1, c_pad), lambda l, p, i, j: (0, 0)),
            ],
            out_specs=pl.BlockSpec((g, c_pad), lambda l, p, i, j: (0, 0)),
            scratch_shapes=[
                pltpu.VMEM((n_pad, f_pad), jnp.float32),   # h (layer output)
                pltpu.VMEM((n_pad, f_pad), jnp.float32),   # c2 * x_centered
                pltpu.VMEM((n_pad, f_pad), jnp.float32),   # invphi slot 0
                pltpu.VMEM((n_pad, f_pad), jnp.float32),   # invphi slot 1
                pltpu.VMEM((tm, f_pad), jnp.float32),      # A@invphi row acc
            ]),
        compiler_params=pltpu.CompilerParams(
            # invphi/h scratch is shared sequential state across row tiles,
            # so no axis can be megacore-"parallel" without cross-core
            # exchange; reduction axis j must be sequential anyway.
            dimension_semantics=("arbitrary", "arbitrary",
                                 "arbitrary", "arbitrary"),
            vmem_limit_bytes=vmem_limit),
    )(a_s, x_p, pool_p, cw, cb, w1, b1, w2, b2)

    return out[:, :nclass]


# ----------------------------------------------------------------------------
# Glue: adjacency normalization, pooling matrix, parameter init, references
# ----------------------------------------------------------------------------

def build_normalized_adj(edge_index, n, mode="DA"):
    """Dense equivalent of to_normalized_sparsetensor (with self-loops)."""
    row, col = edge_index
    a = jnp.zeros((n, n), jnp.float32).at[row, col].set(1.0)
    a = a.at[jnp.arange(n), jnp.arange(n)].set(1.0)          # set_diag()
    deg = jnp.sum(a, axis=1)
    deg_inv_sqrt = jnp.where(deg > 0, deg ** -0.5, 0.0)
    if mode == "DA":
        return (deg_inv_sqrt * deg_inv_sqrt)[:, None] * a
    if mode == "DAD":
        return deg_inv_sqrt[:, None] * a * deg_inv_sqrt[None, :]
    raise ValueError(mode)


def build_pool_matrix(batch, num_graphs):
    """[G, N] matrix s.t. pool @ x == global_mean_pool(x, batch)."""
    onehot = (batch[None, :] == jnp.arange(num_graphs)[:, None]).astype(jnp.float32)
    counts = jnp.sum(onehot, axis=1, keepdims=True)
    return onehot / jnp.maximum(counts, 1.0)


def xavier_uniform(key, fan_in, fan_out):
    a = (6.0 / (fan_in + fan_out)) ** 0.5
    return jax.random.uniform(key, (fan_in, fan_out), jnp.float32, -a, a)


def make_params(key, nfeat, nhid, nclass, nlayer):
    keys = jax.random.split(key, nlayer + 4)
    convs = []
    for i in range(nlayer):
        nin = nfeat if i == 0 else nhid
        convs.append((xavier_uniform(keys[i], nin, nhid),
                      jnp.zeros((1, nhid), jnp.float32)))   # bias init: constant 0
    return {
        "convs": convs,
        "mlp_w1": xavier_uniform(keys[nlayer], nhid, nhid),
        "mlp_b1": jnp.zeros((1, nhid), jnp.float32),
        "mlp_w2": xavier_uniform(keys[nlayer + 1], nhid, nclass),
        "mlp_b2": jnp.zeros((1, nclass), jnp.float32),
    }


def reference_forward_f32(a, x, pool_mat, params, *, alpha, n_powers):
    """Pure f32 plain-JAX reference mirroring the PyTorch semantics."""
    c1, c2 = alpha / (1.0 + alpha), 1.0 / (1.0 + alpha)
    h = x
    for (w, b) in params["convs"]:
        hc = h - jnp.mean(h, axis=0, keepdims=True)
        inv = hc
        for _ in range(n_powers):
            inv = c1 * (a @ inv) + c2 * hc
        h = jnp.maximum(inv @ w + b, 0.0)
    pooled = pool_mat @ h
    m = jnp.maximum(pooled @ params["mlp_w1"] + params["mlp_b1"], 0.0)
    logits = m @ params["mlp_w2"] + params["mlp_b2"]
    return jax.nn.log_softmax(logits, axis=-1)


def reference_forward_bf16(a, x, pool_mat, params, *, alpha, n_powers):
    """Reference matching the kernel's precision (bf16 A, f32 accumulation)."""
    c1, c2 = alpha / (1.0 + alpha), 1.0 / (1.0 + alpha)
    a_s = (c1 * a).astype(jnp.bfloat16)
    h = x
    for (w, b) in params["convs"]:
        hc = h - jnp.mean(h, axis=0, keepdims=True)
        c2x = c2 * hc
        inv = hc
        for _ in range(n_powers):
            inv = jnp.dot(a_s, inv.astype(jnp.bfloat16),
                          preferred_element_type=jnp.float32) + c2x
        h = jnp.maximum(inv @ w + b, 0.0)
    pooled = pool_mat @ h
    m = jnp.maximum(pooled @ params["mlp_w1"] + params["mlp_b1"], 0.0)
    logits = m @ params["mlp_w2"] + params["mlp_b2"]
    return jax.nn.log_softmax(logits, axis=-1)


# ----------------------------------------------------------------------------
# main
# ----------------------------------------------------------------------------

if __name__ == "__main__":
    # Small synthetic graph batch: 2 graphs x 8 nodes each (ring graphs).
    N, NFEAT, NHID, NCLASS, NLAYER = 16, 8, 32, 4, 2
    ALPHA, N_POWERS = 10.0, 5
    NUM_GRAPHS, NODES_PER_GRAPH = 2, 8

    key = jax.random.PRNGKey(0)
    kx, kp = jax.random.split(key)

    x = jax.random.normal(kx, (N, NFEAT), jnp.float32)

    # ring edges (both directions) inside each graph
    rows, cols = [], []
    for gidx in range(NUM_GRAPHS):
        off = gidx * NODES_PER_GRAPH
        for ii in range(NODES_PER_GRAPH):
            jj = (ii + 1) % NODES_PER_GRAPH
            rows += [off + ii, off + jj]
            cols += [off + jj, off + ii]
    edge_index = (jnp.array(rows, jnp.int32), jnp.array(cols, jnp.int32))
    batch = jnp.repeat(jnp.arange(NUM_GRAPHS, dtype=jnp.int32), NODES_PER_GRAPH)

    a = build_normalized_adj(edge_index, N, mode="DA")
    pool_mat = build_pool_matrix(batch, NUM_GRAPHS)
    params = make_params(kp, NFEAT, NHID, NCLASS, NLAYER)

    out = gpcanet_forward(a, x, pool_mat, params, alpha=ALPHA, n_powers=N_POWERS)
    out = jax.block_until_ready(out)
    assert out.shape == (NUM_GRAPHS, NCLASS)

    # Primary check: precision-matched reference (bf16 A, f32 accumulation).
    ref = reference_forward_bf16(a, x, pool_mat, params,
                                 alpha=ALPHA, n_powers=N_POWERS)
    assert jnp.allclose(out, ref, atol=2e-3, rtol=2e-3), (out, ref)

    # Sanity check against the pure-f32 torch-equivalent reference
    # (loose tolerance: A is quantized to bf16 inside the kernel).
    ref32 = reference_forward_f32(a, x, pool_mat, params,
                                  alpha=ALPHA, n_powers=N_POWERS)
    assert jnp.allclose(out, ref32, atol=5e-2, rtol=5e-2), (out, ref32)

    print("KERNEL_OK")
</pallas_src>

<mosaic_0001>
module attributes {stable_mosaic.version = 11 : i64} {
  func.func @_gpcanet_kernel(%arg0: i32, %arg1: i32, %arg2: i32, %arg3: i32, %arg4: memref<16x16xbf16, #tpu.memory_space<vmem>>, %arg5: memref<16x128xf32, #tpu.memory_space<vmem>>, %arg6: memref<2x16xf32, #tpu.memory_space<vmem>>, %arg7: memref<1x128x128xf32, #tpu.memory_space<vmem>>, %arg8: memref<1x1x128xf32, #tpu.memory_space<vmem>>, %arg9: memref<128x128xf32, #tpu.memory_space<vmem>>, %arg10: memref<1x128xf32, #tpu.memory_space<vmem>>, %arg11: memref<128x128xf32, #tpu.memory_space<vmem>>, %arg12: memref<1x128xf32, #tpu.memory_space<vmem>>, %arg13: memref<2x128xf32, #tpu.memory_space<vmem>>, %arg14: memref<16x128xf32, #tpu.memory_space<vmem>>, %arg15: memref<16x128xf32, #tpu.memory_space<vmem>>, %arg16: memref<16x128xf32, #tpu.memory_space<vmem>>, %arg17: memref<16x128xf32, #tpu.memory_space<vmem>>, %arg18: memref<16x128xf32, #tpu.memory_space<vmem>>) attributes {dimension_semantics = [#tpu.dimension_semantics<arbitrary>, #tpu.dimension_semantics<arbitrary>, #tpu.dimension_semantics<arbitrary>, #tpu.dimension_semantics<arbitrary>], iteration_bounds = array<i64: 2, 5, 1, 1>, scalar_prefetch = 0 : i64, scratch_operands = 5 : i64, tpu.core_type = #tpu.core_type<tc>, window_params = [{transform_indices = @transform_0, window_bounds = array<i64: 16, 16>}, {pipeline_mode = #tpu.pipeline_mode<synchronous>, transform_indices = @transform_1, window_bounds = array<i64: 16, 128>}, {pipeline_mode = #tpu.pipeline_mode<synchronous>, transform_indices = @transform_2, window_bounds = array<i64: 2, 16>}, {transform_indices = @transform_3, window_bounds = array<i64: 1, 128, 128>}, {transform_indices = @transform_4, window_bounds = array<i64: 1, 1, 128>}, {pipeline_mode = #tpu.pipeline_mode<synchronous>, transform_indices = @transform_5, window_bounds = array<i64: 128, 128>}, {pipeline_mode = #tpu.pipeline_mode<synchronous>, transform_indices = @transform_6, window_bounds = array<i64: 1, 128>}, {pipeline_mode = #tpu.pipeline_mode<synchronous>, transform_indices = @transform_7, window_bounds = array<i64: 128, 128>}, {pipeline_mode = #tpu.pipeline_mode<synchronous>, transform_indices = @transform_8, window_bounds = array<i64: 1, 128>}, {pipeline_mode = #tpu.pipeline_mode<synchronous>, transform_indices = @transform_9, window_bounds = array<i64: 2, 128>}]} {
    %c0_i32 = arith.constant 0 : i32
    %0 = arith.cmpi eq, %arg1, %c0_i32 : i32
    %c0_i32_0 = arith.constant 0 : i32
    %1 = arith.cmpi eq, %arg2, %c0_i32_0 : i32
    %2 = arith.andi %0, %1 : i1
    %c0_i32_1 = arith.constant 0 : i32
    %3 = arith.cmpi eq, %arg3, %c0_i32_1 : i32
    %4 = arith.andi %2, %3 : i1
    %5 = arith.extui %4 : i1 to i32
    %c0_i32_2 = arith.constant 0 : i32
    %6 = arith.cmpi ne, %5, %c0_i32_2 : i32
    scf.if %6 {
      %c0_i32_18 = arith.constant 0 : i32
      %39 = arith.cmpi eq, %arg0, %c0_i32_18 : i32
      %40 = arith.extui %39 : i1 to i32
      %c0_i32_19 = arith.constant 0 : i32
      %41 = arith.cmpi ne, %40, %c0_i32_19 : i32
      scf.if %41 {
        %c0_28 = arith.constant 0 : index
        %c0_29 = arith.constant 0 : index
        %53 = vector.load %arg5[%c0_28, %c0_29] : memref<16x128xf32, #tpu.memory_space<vmem>>, vector<16x128xf32>
        %c0_30 = arith.constant 0 : index
        %c0_31 = arith.constant 0 : index
        %54 = vector.load %arg14[%c0_30, %c0_31] : memref<16x128xf32, #tpu.memory_space<vmem>>, vector<16x128xf32>
        tpu.vector_store %arg14[%c0_30, %c0_31], %53 {strides = array<i32>} : memref<16x128xf32, #tpu.memory_space<vmem>>, vector<16x128xf32>,
      } else {
      }
      %c0_20 = arith.constant 0 : index
      %c0_21 = arith.constant 0 : index
      %42 = vector.load %arg14[%c0_20, %c0_21] : memref<16x128xf32, #tpu.memory_space<vmem>>, vector<16x128xf32>
      %cst = arith.constant dense<0.000000e+00> : vector<128xf32>
      %43 = vector.multi_reduction <add>, %42, %cst [0] : vector<16x128xf32> to vector<128xf32>
      %44 = vector.shape_cast %43 : vector<128xf32> to vector<1x128xf32>
      %cst_22 = arith.constant 6.250000e-02 : f32
      %45 = vector.broadcast %cst_22 : f32 to vector<1x128xf32>
      %46 = arith.mulf %44, %45 : vector<1x128xf32>
      %47 = vector.broadcast %46 : vector<1x128xf32> to vector<16x128xf32>
      %48 = arith.subf %42, %47 : vector<16x128xf32>
      %c0_23 = arith.constant 0 : index
      %c0_24 = arith.constant 0 : index
      %49 = vector.load %arg16[%c0_23, %c0_24] : memref<16x128xf32, #tpu.memory_space<vmem>>, vector<16x128xf32>
      tpu.vector_store %arg16[%c0_23, %c0_24], %48 {strides = array<i32>} : memref<16x128xf32, #tpu.memory_space<vmem>>, vector<16x128xf32>,
      %cst_25 = arith.constant 0.0909090936 : f32
      %50 = vector.broadcast %cst_25 : f32 to vector<16x128xf32>
      %51 = arith.mulf %50, %48 : vector<16x128xf32>
      %c0_26 = arith.constant 0 : index
      %c0_27 = arith.constant 0 : index
      %52 = vector.load %arg15[%c0_26, %c0_27] : memref<16x128xf32, #tpu.memory_space<vmem>>, vector<16x128xf32>
      tpu.vector_store %arg15[%c0_26, %c0_27], %51 {strides = array<i32>} : memref<16x128xf32, #tpu.memory_space<vmem>>, vector<16x128xf32>,
    } else {
    }
    %c0 = arith.constant 0 : index
    %c0_3 = arith.constant 0 : index
    %7 = vector.load %arg4[%c0, %c0_3] : memref<16x16xbf16, #tpu.memory_space<vmem>>, vector<16x16xbf16>
    %c16_i32 = arith.constant 16 : i32
    %8 = arith.muli %arg2, %c16_i32 : i32
    %9 = tpu.assume_multiple %8, 16 : i32
    %c16_i32_4 = arith.constant 16 : i32
    %10 = arith.muli %arg3, %c16_i32_4 : i32
    %11 = tpu.assume_multiple %10, 16 : i32
    %c2_i32 = arith.constant 2 : i32
    %c0_i32_5 = arith.constant 0 : i32
    %12 = arith.cmpi eq, %c2_i32, %c0_i32_5 : i32
    %c1_i32 = arith.constant 1 : i32
    %13 = arith.select %12, %c1_i32, %c2_i32 : i32
    %14 = arith.remsi %arg1, %13 : i32
    %c0_i32_6 = arith.constant 0 : i32
    %15 = arith.cmpi ne, %14, %c0_i32_6 : i32
    %c0_i32_7 = arith.constant 0 : i32
    %16 = arith.cmpi slt, %14, %c0_i32_7 : i32
    %c0_i32_8 = arith.constant 0 : i32
    %17 = arith.cmpi slt, %13, %c0_i32_8 : i32
    %18 = arith.xori %16, %17 : i1
    %19 = arith.andi %18, %15 : i1
    %20 = arith.addi %14, %13 : i32
    %21 = arith.select %19, %20, %14 : i32
    %c0_i32_9 = arith.constant 0 : i32
    %22 = arith.cmpi eq, %21, %c0_i32_9 : i32
    %23 = arith.extui %22 : i1 to i32
    %c0_i32_10 = arith.constant 0 : i32
    %24 = arith.cmpi ne, %23, %c0_i32_10 : i32
    scf.if %24 {
      %c0_i32_18 = arith.constant 0 : i32
      %39 = arith.cmpi eq, %arg3, %c0_i32_18 : i32
      %40 = arith.extui %39 : i1 to i32
      %c0_i32_19 = arith.constant 0 : i32
      %41 = arith.cmpi ne, %40, %c0_i32_19 : i32
      scf.if %41 {
        %cst_27 = arith.constant 0.000000e+00 : f32
        %52 = vector.broadcast %cst_27 : f32 to vector<16x128xf32>
        %c0_28 = arith.constant 0 : index
        %c0_29 = arith.constant 0 : index
        %53 = vector.load %arg18[%c0_28, %c0_29] : memref<16x128xf32, #tpu.memory_space<vmem>>, vector<16x128xf32>
        tpu.vector_store %arg18[%c0_28, %c0_29], %52 {strides = array<i32>} : memref<16x128xf32, #tpu.memory_space<vmem>>, vector<16x128xf32>,
      } else {
      }
      %42 = arith.index_cast %11 : i32 to index
      %c0_20 = arith.constant 0 : index
      %43 = vector.load %arg16[%42, %c0_20] : memref<16x128xf32, #tpu.memory_space<vmem>>, vector<16x128xf32>
      %44 = arith.truncf %43 : vector<16x128xf32> to vector<16x128xbf16>
      %c0_21 = arith.constant 0 : index
      %c0_22 = arith.constant 0 : index
      %45 = vector.load %arg18[%c0_21, %c0_22] : memref<16x128xf32, #tpu.memory_space<vmem>>, vector<16x128xf32>
      %cst = arith.constant dense<0.000000e+00> : vector<16x128xf32>
      %46 = tpu.matmul %7, %44, %cst {dimension_numbers = #tpu.dot_dimension_numbers<[1], [0], [0], [1], [0, 0, 1, 1], [], []>} : vector<16x16xbf16>, vector<16x128xbf16>, vector<16x128xf32> -> vector<16x128xf32>
      %47 = arith.addf %45, %46 : vector<16x128xf32>
      %c0_23 = arith.constant 0 : index
      %c0_24 = arith.constant 0 : index
      %48 = vector.load %arg18[%c0_23, %c0_24] : memref<16x128xf32, #tpu.memory_space<vmem>>, vector<16x128xf32>
      tpu.vector_store %arg18[%c0_23, %c0_24], %47 {strides = array<i32>} : memref<16x128xf32, #tpu.memory_space<vmem>>, vector<16x128xf32>,
      %c0_i32_25 = arith.constant 0 : i32
      %49 = arith.cmpi eq, %arg3, %c0_i32_25 : i32
      %50 = arith.extui %49 : i1 to i32
      %c0_i32_26 = arith.constant 0 : i32
      %51 = arith.cmpi ne, %50, %c0_i32_26 : i32
      scf.if %51 {
        %c0_27 = arith.constant 0 : index
        %c0_28 = arith.constant 0 : index
        %52 = vector.load %arg18[%c0_27, %c0_28] : memref<16x128xf32, #tpu.memory_space<vmem>>, vector<16x128xf32>
        %53 = arith.index_cast %9 : i32 to index
        %c0_29 = arith.constant 0 : index
        %54 = vector.load %arg15[%53, %c0_29] : memref<16x128xf32, #tpu.memory_space<vmem>>, vector<16x128xf32>
        %55 = arith.addf %52, %54 : vector<16x128xf32>
        %56 = arith.index_cast %9 : i32 to index
        %c0_30 = arith.constant 0 : index
        %57 = vector.load %arg17[%56, %c0_30] : memref<16x128xf32, #tpu.memory_space<vmem>>, vector<16x128xf32>
        tpu.vector_store %arg17[%56, %c0_30], %55 {strides = array<i32>} : memref<16x128xf32, #tpu.memory_space<vmem>>, vector<16x128xf32>,
      } else {
      }
    } else {
    }
    %c1_i32_11 = arith.constant 1 : i32
    %25 = arith.cmpi eq, %21, %c1_i32_11 : i32
    %26 = arith.extui %25 : i1 to i32
    %c0_i32_12 = arith.constant 0 : i32
    %27 = arith.cmpi ne, %26, %c0_i32_12 : i32
    scf.if %27 {
      %c0_i32_18 = arith.constant 0 : i32
      %39 = arith.cmpi eq, %arg3, %c0_i32_18 : i32
      %40 = arith.extui %39 : i1 to i32
      %c0_i32_19 = arith.constant 0 : i32
      %41 = arith.cmpi ne, %40, %c0_i32_19 : i32
      scf.if %41 {
        %cst_27 = arith.constant 0.000000e+00 : f32
        %52 = vector.broadcast %cst_27 : f32 to vector<16x128xf32>
        %c0_28 = arith.constant 0 : index
        %c0_29 = arith.constant 0 : index
        %53 = vector.load %arg18[%c0_28, %c0_29] : memref<16x128xf32, #tpu.memory_space<vmem>>, vector<16x128xf32>
        tpu.vector_store %arg18[%c0_28, %c0_29], %52 {strides = array<i32>} : memref<16x128xf32, #tpu.memory_space<vmem>>, vector<16x128xf32>,
      } else {
      }
      %42 = arith.index_cast %11 : i32 to index
      %c0_20 = arith.constant 0 : index
      %43 = vector.load %arg17[%42, %c0_20] : memref<16x128xf32, #tpu.memory_space<vmem>>, vector<16x128xf32>
      %44 = arith.truncf %43 : vector<16x128xf32> to vector<16x128xbf16>
      %c0_21 = arith.constant 0 : index
      %c0_22 = arith.constant 0 : index
      %45 = vector.load %arg18[%c0_21, %c0_22] : memref<16x128xf32, #tpu.memory_space<vmem>>, vector<16x128xf32>
      %cst = arith.constant dense<0.000000e+00> : vector<16x128xf32>
      %46 = tpu.matmul %7, %44, %cst {dimension_numbers = #tpu.dot_dimension_numbers<[1], [0], [0], [1], [0, 0, 1, 1], [], []>} : vector<16x16xbf16>, vector<16x128xbf16>, vector<16x128xf32> -> vector<16x128xf32>
      %47 = arith.addf %45, %46 : vector<16x128xf32>
      %c0_23 = arith.constant 0 : index
      %c0_24 = arith.constant 0 : index
      %48 = vector.load %arg18[%c0_23, %c0_24] : memref<16x128xf32, #tpu.memory_space<vmem>>, vector<16x128xf32>
      tpu.vector_store %arg18[%c0_23, %c0_24], %47 {strides = array<i32>} : memref<16x128xf32, #tpu.memory_space<vmem>>, vector<16x128xf32>,
      %c0_i32_25 = arith.constant 0 : i32
      %49 = arith.cmpi eq, %arg3, %c0_i32_25 : i32
      %50 = arith.extui %49 : i1 to i32
      %c0_i32_26 = arith.constant 0 : i32
      %51 = arith.cmpi ne, %50, %c0_i32_26 : i32
      scf.if %51 {
        %c0_27 = arith.constant 0 : index
        %c0_28 = arith.constant 0 : index
        %52 = vector.load %arg18[%c0_27, %c0_28] : memref<16x128xf32, #tpu.memory_space<vmem>>, vector<16x128xf32>
        %53 = arith.index_cast %9 : i32 to index
        %c0_29 = arith.constant 0 : index
        %54 = vector.load %arg15[%53, %c0_29] : memref<16x128xf32, #tpu.memory_space<vmem>>, vector<16x128xf32>
        %55 = arith.addf %52, %54 : vector<16x128xf32>
        %56 = arith.index_cast %9 : i32 to index
        %c0_30 = arith.constant 0 : index
        %57 = vector.load %arg16[%56, %c0_30] : memref<16x128xf32, #tpu.memory_space<vmem>>, vector<16x128xf32>
        tpu.vector_store %arg16[%56, %c0_30], %55 {strides = array<i32>} : memref<16x128xf32, #tpu.memory_space<vmem>>, vector<16x128xf32>,
      } else {
      }
    } else {
    }
    %c4_i32 = arith.constant 4 : i32
    %28 = arith.cmpi eq, %arg1, %c4_i32 : i32
    %c0_i32_13 = arith.constant 0 : i32
    %29 = arith.cmpi eq, %arg2, %c0_i32_13 : i32
    %30 = arith.andi %28, %29 : i1
    %c0_i32_14 = arith.constant 0 : i32
    %31 = arith.cmpi eq, %arg3, %c0_i32_14 : i32
    %32 = arith.andi %30, %31 : i1
    %33 = arith.extui %32 : i1 to i32
    %c0_i32_15 = arith.constant 0 : i32
    %34 = arith.cmpi ne, %33, %c0_i32_15 : i32
    scf.if %34 {
      %c0_18 = arith.constant 0 : index
      %c0_19 = arith.constant 0 : index
      %39 = vector.load %arg17[%c0_18, %c0_19] : memref<16x128xf32, #tpu.memory_space<vmem>>, vector<16x128xf32>
      %c0_20 = arith.constant 0 : index
      %c0_21 = arith.constant 0 : index
      %c0_22 = arith.constant 0 : index
      %40 = vector.load %arg7[%c0_20, %c0_21, %c0_22] : memref<1x128x128xf32, #tpu.memory_space<vmem>>, vector<1x128x128xf32>
      %41 = vector.shape_cast %40 : vector<1x128x128xf32> to vector<128x128xf32>
      %cst = arith.constant dense<0.000000e+00> : vector<16x128xf32>
      %42 = tpu.matmul %39, %41, %cst {dimension_numbers = #tpu.dot_dimension_numbers<[1], [0], [0], [1], [0, 0, 1, 1], [], []>} : vector<16x128xf32>, vector<128x128xf32>, vector<16x128xf32> -> vector<16x128xf32>
      %c0_23 = arith.constant 0 : index
      %c0_24 = arith.constant 0 : index
      %c0_25 = arith.constant 0 : index
      %43 = vector.load %arg8[%c0_23, %c0_24, %c0_25] : memref<1x1x128xf32, #tpu.memory_space<vmem>>, vector<1x1x128xf32>
      %44 = vector.shape_cast %43 : vector<1x1x128xf32> to vector<1x128xf32>
      %45 = vector.broadcast %44 : vector<1x128xf32> to vector<16x128xf32>
      %46 = arith.addf %42, %45 : vector<16x128xf32>
      %cst_26 = arith.constant 0.000000e+00 : f32
      %47 = vector.broadcast %cst_26 : f32 to vector<16x128xf32>
      %48 = arith.maximumf %46, %47 : vector<16x128xf32>
      %49 = tpu.iota {dimensions = array<i32: 0>} : vector<16x1xi32>
      %c16_i32_27 = arith.constant 16 : i32
      %50 = vector.broadcast %c16_i32_27 : i32 to vector<16x1xi32>
      %51 = arith.cmpi slt, %49, %50 : vector<16x1xi32>
      %cst_28 = arith.constant 0.000000e+00 : f32
      %52 = vector.shape_cast %51 : vector<16x1xi1> to vector<16x1xi1>
      %53 = vector.broadcast %52 : vector<16x1xi1> to vector<16x128xi1>
      %54 = vector.broadcast %cst_28 : f32 to vector<16x128xf32>
      %55 = arith.select %53, %48, %54 : vector<16x128xi1>, vector<16x128xf32>
      %c0_29 = arith.constant 0 : index
      %c0_30 = arith.constant 0 : index
      %56 = vector.load %arg14[%c0_29, %c0_30] : memref<16x128xf32, #tpu.memory_space<vmem>>, vector<16x128xf32>
      tpu.vector_store %arg14[%c0_29, %c0_30], %55 {strides = array<i32>} : memref<16x128xf32, #tpu.memory_space<vmem>>, vector<16x128xf32>,
    } else {
    }
    %c1_i32_16 = arith.constant 1 : i32
    %35 = arith.cmpi eq, %arg0, %c1_i32_16 : i32
    %36 = arith.andi %32, %35 : i1
    %37 = arith.extui %36 : i1 to i32
    %c0_i32_17 = arith.constant 0 : i32
    %38 = arith.cmpi ne, %37, %c0_i32_17 : i32
    scf.if %38 {
      %c0_18 = arith.constant 0 : index
      %c0_19 = arith.constant 0 : index
      %39 = vector.load %arg6[%c0_18, %c0_19] : memref<2x16xf32, #tpu.memory_space<vmem>>, vector<2x16xf32>
      %c0_20 = arith.constant 0 : index
      %c0_21 = arith.constant 0 : index
      %40 = vector.load %arg14[%c0_20, %c0_21] : memref<16x128xf32, #tpu.memory_space<vmem>>, vector<16x128xf32>
      %cst = arith.constant dense<0.000000e+00> : vector<2x128xf32>
      %41 = tpu.matmul %39, %40, %cst {dimension_numbers = #tpu.dot_dimension_numbers<[1], [0], [0], [1], [0, 0, 1, 1], [], []>} : vector<2x16xf32>, vector<16x128xf32>, vector<2x128xf32> -> vector<2x128xf32>
      %c0_22 = arith.constant 0 : index
      %c0_23 = arith.constant 0 : index
      %42 = vector.load %arg9[%c0_22, %c0_23] : memref<128x128xf32, #tpu.memory_space<vmem>>, vector<128x128xf32>
      %cst_24 = arith.constant dense<0.000000e+00> : vector<2x128xf32>
      %43 = tpu.matmul %41, %42, %cst_24 {dimension_numbers = #tpu.dot_dimension_numbers<[1], [0], [0], [1], [0, 0, 1, 1], [], []>} : vector<2x128xf32>, vector<128x128xf32>, vector<2x128xf32> -> vector<2x128xf32>
      %c0_25 = arith.constant 0 : index
      %c0_26 = arith.constant 0 : index
      %44 = vector.load %arg10[%c0_25, %c0_26] : memref<1x128xf32, #tpu.memory_space<vmem>>, vector<1x128xf32>
      %45 = vector.broadcast %44 : vector<1x128xf32> to vector<2x128xf32>
      %46 = arith.addf %43, %45 : vector<2x128xf32>
      %cst_27 = arith.constant 0.000000e+00 : f32
      %47 = vector.broadcast %cst_27 : f32 to vector<2x128xf32>
      %48 = arith.maximumf %46, %47 : vector<2x128xf32>
      %c0_28 = arith.constant 0 : index
      %c0_29 = arith.constant 0 : index
      %49 = vector.load %arg11[%c0_28, %c0_29] : memref<128x128xf32, #tpu.memory_space<vmem>>, vector<128x128xf32>
      %cst_30 = arith.constant dense<0.000000e+00> : vector<2x128xf32>
      %50 = tpu.matmul %48, %49, %cst_30 {dimension_numbers = #tpu.dot_dimension_numbers<[1], [0], [0], [1], [0, 0, 1, 1], [], []>} : vector<2x128xf32>, vector<128x128xf32>, vector<2x128xf32> -> vector<2x128xf32>
      %c0_31 = arith.constant 0 : index
      %c0_32 = arith.constant 0 : index
      %51 = vector.load %arg12[%c0_31, %c0_32] : memref<1x128xf32, #tpu.memory_space<vmem>>, vector<1x128xf32>
      %52 = vector.broadcast %51 : vector<1x128xf32> to vector<2x128xf32>
      %53 = arith.addf %50, %52 : vector<2x128xf32>
      %54 = tpu.iota {dimensions = array<i32: 1>} : vector<2x128xi32>
      %c4_i32_33 = arith.constant 4 : i32
      %55 = vector.broadcast %c4_i32_33 : i32 to vector<2x128xi32>
      %56 = arith.cmpi slt, %54, %55 : vector<2x128xi32>
      %cst_34 = arith.constant -1.000000e+30 : f32
      %57 = vector.broadcast %cst_34 : f32 to vector<2x128xf32>
      %58 = arith.select %56, %53, %57 : vector<2x128xi1>, vector<2x128xf32>
      %cst_35 = arith.constant dense<0xFF800000> : vector<2xf32>
      %59 = vector.multi_reduction <maximumf>, %58, %cst_35 [1] : vector<2x128xf32> to vector<2xf32>
      %60 = vector.shape_cast %59 : vector<2xf32> to vector<2x1xf32>
      %61 = vector.broadcast %60 : vector<2x1xf32> to vector<2x128xf32>
      %62 = arith.subf %58, %61 : vector<2x128xf32>
      %63 = math.exp %62 : vector<2x128xf32>
      %cst_36 = arith.constant dense<0.000000e+00> : vector<2xf32>
      %64 = vector.multi_reduction <add>, %63, %cst_36 [1] : vector<2x128xf32> to vector<2xf32>
      %65 = vector.shape_cast %64 : vector<2xf32> to vector<2x1xf32>
      %66 = math.log %65 : vector<2x1xf32>
      %67 = vector.broadcast %66 : vector<2x1xf32> to vector<2x128xf32>
      %68 = arith.subf %62, %67 : vector<2x128xf32>
      %c0_37 = arith.constant 0 : index
      %c0_38 = arith.constant 0 : index
      %69 = vector.load %arg13[%c0_37, %c0_38] : memref<2x128xf32, #tpu.memory_space<vmem>>, vector<2x128xf32>
      tpu.vector_store %arg13[%c0_37, %c0_38], %68 {strides = array<i32>} : memref<2x128xf32, #tpu.memory_space<vmem>>, vector<2x128xf32>,
    } else {
    }
    return
  }
  func.func @transform_0(%arg0: i32, %arg1: i32, %arg2: i32, %arg3: i32) -> (i32, i32) {
    %c0_i32 = arith.constant 0 : i32
    return %arg2, %arg3 : i32, i32
  }
  func.func @transform_1(%arg0: i32, %arg1: i32, %arg2: i32, %arg3: i32) -> (i32, i32) {
    %c0_i32 = arith.constant 0 : i32
    %c0_i32_0 = arith.constant 0 : i32
    %c0_i32_1 = arith.constant 0 : i32
    return %c0_i32, %c0_i32_0 : i32, i32
  }
  func.func @transform_2(%arg0: i32, %arg1: i32, %arg2: i32, %arg3: i32) -> (i32, i32) {
    %c0_i32 = arith.constant 0 : i32
    %c0_i32_0 = arith.constant 0 : i32
    %c0_i32_1 = arith.constant 0 : i32
    return %c0_i32, %c0_i32_0 : i32, i32
  }
  func.func @transform_3(%arg0: i32, %arg1: i32, %arg2: i32, %arg3: i32) -> (i32, i32, i32) {
    %c0_i32 = arith.constant 0 : i32
    %c0_i32_0 = arith.constant 0 : i32
    %c0_i32_1 = arith.constant 0 : i32
    return %arg0, %c0_i32, %c0_i32_0 : i32, i32, i32
  }
  func.func @transform_4(%arg0: i32, %arg1: i32, %arg2: i32, %arg3: i32) -> (i32, i32, i32) {
    %c0_i32 = arith.constant 0 : i32
    %c0_i32_0 = arith.constant 0 : i32
    %c0_i32_1 = arith.constant 0 : i32
    return %arg0, %c0_i32, %c0_i32_0 : i32, i32, i32
  }
  func.func @transform_5(%arg0: i32, %arg1: i32, %arg2: i32, %arg3: i32) -> (i32, i32) {
    %c0_i32 = arith.constant 0 : i32
    %c0_i32_0 = arith.constant 0 : i32
    %c0_i32_1 = arith.constant 0 : i32
    return %c0_i32, %c0_i32_0 : i32, i32
  }
  func.func @transform_6(%arg0: i32, %arg1: i32, %arg2: i32, %arg3: i32) -> (i32, i32) {
    %c0_i32 = arith.constant 0 : i32
    %c0_i32_0 = arith.constant 0 : i32
    %c0_i32_1 = arith.constant 0 : i32
    return %c0_i32, %c0_i32_0 : i32, i32
  }
  func.func @transform_7(%arg0: i32, %arg1: i32, %arg2: i32, %arg3: i32) -> (i32, i32) {
    %c0_i32 = arith.constant 0 : i32
    %c0_i32_0 = arith.constant 0 : i32
    %c0_i32_1 = arith.constant 0 : i32
    return %c0_i32, %c0_i32_0 : i32, i32
  }
  func.func @transform_8(%arg0: i32, %arg1: i32, %arg2: i32, %arg3: i32) -> (i32, i32) {
    %c0_i32 = arith.constant 0 : i32
    %c0_i32_0 = arith.constant 0 : i32
    %c0_i32_1 = arith.constant 0 : i32
    return %c0_i32, %c0_i32_0 : i32, i32
  }
  func.func @transform_9(%arg0: i32, %arg1: i32, %arg2: i32, %arg3: i32) -> (i32, i32) {
    %c0_i32 = arith.constant 0 : i32
    %c0_i32_0 = arith.constant 0 : i32
    %c0_i32_1 = arith.constant 0 : i32
    return %c0_i32, %c0_i32_0 : i32, i32
  }
}

</mosaic_0001>

<bundles_post_ra>
// kernel: tpu_custom_call.1
= control target key start
LH: loop header
LB: loop body
LE: loop exit
PB: predicated region body
PF: predicated region fallthrough
CT: control target
= control target key end

     0   :  { %s2176_s0 = inlined_call_operand.hbm [shape: bf16[16,16], index: 0, kind: input, shape index: {}]   ;;  %s2177_s1 = inlined_call_operand.hbm [shape: f32[16,128], index: 1, kind: input, shape index: {}]   ;;  %s2178_s2 = inlined_call_operand.vmem [shape: f32[2,16], index: 2, kind: input, shape index: {}]   ;;  %s2179_s3 = inlined_call_operand.hbm [shape: f32[2,128,128], index: 3, kind: input, shape index: {}]   ;;  %s2180_s4 = inlined_call_operand.vmem [shape: f32[2,1,128], index: 4, kind: input, shape index: {}]   ;;  %s2181_s5 = inlined_call_operand.hbm [shape: f32[128,128], index: 5, kind: input, shape index: {}]   ;;  %s2182_s6 = inlined_call_operand.vmem [shape: f32[1,128], index: 6, kind: input, shape index: {}]   ;;  %s2183_s7 = inlined_call_operand.hbm [shape: f32[128,128], index: 7, kind: input, shape index: {}]   ;;  %s2184_s8 = inlined_call_operand.vmem [shape: f32[1,128], index: 8, kind: input, shape index: {}]   ;;  %s2185_s9 = inlined_call_operand.hbm [shape: f32[2,128], index: 9, kind: output, shape index: {}]  }
   0x1   :  { %2190 = sst [smem:[#allocation25_spill]] %s2176_s0 }
   0x2   :  { %2191 = sst [smem:[#allocation26_spill]] %s2177_s1 }
   0x3   :  { %2192 = sst [smem:[#allocation27_spill]] %s2181_s5 }
   0x4   :  { %2193 = sst [smem:[#allocation28_spill]] %s2183_s7 }
   0x5   :  { %14 = vsyncpa [#allocation8], 0 }
   0x6   :  { %15 = vsyncpa [#allocation11], 0 }
   0x7   :  { %16 = vsyncpa [#allocation15], 0 }
   0x8   :  { %17 = vsyncpa [#allocation9], 0  ;;  %s1879_s30 = smov 0   ;;  %s1881_s10 = smov 0  }
   0x9   :  { %s1883_s11 = smov 0   ;;  %s1885_s12 = smov 0  }
   0xa   :  { %s1887_s13 = smov 0   ;;  %s1889_s14 = smov 0  }
   0xb   :  { %s1891_s15 = smov 0   ;;  %s1893_s16 = smov 0  }
   0xc LB: > { %2194 = sst [smem:[#allocation23_spill]] %s1803_s14  ;;  %s1918_s17 = sadd.s32 4294967295, %s1811_s16   ;;  %s1811_s16 = sphi %s1893_s16, %s23_s16   ;;  %s1807_s15 = sphi %s1891_s15, %s2221_s15   ;;  %s1803_s14 = sphi %s1889_s14, %s2216_s14   ;;  %s1799_s13 = sphi %s1887_s13, %s2220_s13   ;;  %s1795_s12 = sphi %s1885_s12, %s2215_s12   ;;  %s1791_s11 = sphi %s1883_s11, %s2219_s11   ;;  %s1787_s10 = sphi %s1881_s10, %s2218_s10   ;;  %s1783_s30 = sphi %s1879_s30, %s2217_s30  }
   0xd   : > { %p139_p0 = scmp.ne.s32.totalorder %s1787_s10, %s1783_s30  ;;  %p2186_p1 = scmp.eq.s32.totalorder %s1918_s17, 0 }
   0xe   : > { %p1211_p2 = scmp.ge.s32.totalorder %s1811_s16, 1  ;;  %p281_p3 = scmp.lt.s32.totalorder %s1811_s16, 11 }
   0xf   : > { %p1926_p4 = por %p2186_p1, %p139_p0  ;;  %s1813_s20 = smov [#allocation7]  }
  0x10   : > { %p1930_p5 = pnand %p1211_p2, %p281_p3  ;;  %s297_s21 = sshll.u32 %s1813_s20, 4  ;;  %s298_s21 = int_to_ptr.vmem [resolvable:$true] %s297_s21 }
  0x11   : > { %s1814_s23 = smov [#allocation10]   ;;  %s1580_s25 = scalar_lea.vmem %s298_s21, 128 }
  0x12   : > { %p1458_p6 = pneg %p1930_p5  ;;  %s310_s24 = sshll.u32 %s1814_s23, 4  ;;  %s311_s24 = int_to_ptr.vmem [resolvable:$true] %s310_s24 }
  0x13   : > { %p1581_p9 = scmp.ne.s32.totalorder %s298_s21, %s1580_s25  ;;  %p1588_p12 = scmp.lt.s32.totalorder %s298_s21, %s298_s21 }
  0x14   : > { %p1938_p7 = pnand %p1458_p6, %p2186_p1  ;;  %p1589_p13 = scmp.lt.s32.totalorder %s1580_s25, %s1580_s25 }
  0x16   : > { %p1571_p8 = pneg %p1938_p7  ;;  %p1590_p0 = por %p1589_p13, %p1588_p12 }
  0x18   : > { %p1583_p10 = pnand %p1581_p9, %p1571_p8 }
  0x1a   : > { %p1584_p11 = pneg %p1583_p10 }
  0x1c   : > { %p1591_p2 = pnand %p1590_p0, %p1584_p11 }
  0x1e   : > { %1594 = shalt.err (!%p1591_p2)
}
  0x1f   : > { %s1815_s26 = smov 64   ;;  %s1816_s27 = smov 4  }
  0x20   : > { %s2198_s0 = sld [smem:[#allocation25_spill]]  ;;  %s1606_s30 = scalar_lea.vmem %s311_s24, 256 }
  0x21   : > { %p1607_p3 = scmp.ne.s32.totalorder %s311_s24, %s1606_s30  ;;  %p1614_p10 = scmp.lt.s32.totalorder %s311_s24, %s311_s24 }
  0x22   : > { %p1615_p1 = scmp.lt.s32.totalorder %s1606_s30, %s1606_s30 }
  0x23   : > { %p1609_p6 = pnand %p1607_p3, %p1571_p8 }
  0x24   : > { %p1616_p12 = por %p1615_p1, %p1614_p10 }
  0x25   : > { %p1610_p9 = pneg %p1609_p6 }
  0x26   : > { %1461 = dma.hbm_to_vmem [thread:$0]  (!%p1938_p7), %s2198_s0, 128, %s298_s21, [#allocation8], %s1815_s26, %s1815_s26, %s1816_s27  }
  0x27   : > { %p1617_p11 = pnand %p1616_p12, %p1610_p9 }
  0x29   : > { %1620 = shalt.err (!%p1617_p11)
}
  0x2a   : > { %s2187_s20 = smov 128   ;;  %s2188_s23 = smov 8  }
  0x2b   : > { %s2199_s1 = sld [smem:[#allocation26_spill]]  ;;  %s1819_s26 = smov [#allocation13]  }
  0x2c   : > { %s326_s27 = sshll.u32 %s1819_s26, 4  ;;  %s1820_s28 = smov [#allocation14]   ;;  %s327_s27 = int_to_ptr.vmem [resolvable:$true] %s326_s27 }
  0x2d   : > { %s342_s29 = sshll.u32 %s1820_s28, 4  ;;  %s1632_s30 = scalar_lea.vmem %s327_s27, 2048  ;;  %s343_s29 = int_to_ptr.vmem [resolvable:$true] %s342_s29 }
  0x2e   : > { %p1633_p1 = scmp.ne.s32.totalorder %s327_s27, %s1632_s30  ;;  %p1640_p2 = scmp.lt.s32.totalorder %s327_s27, %s327_s27 }
  0x2f   : > { %p1641_p3 = scmp.lt.s32.totalorder %s1632_s30, %s1632_s30 }
  0x30   : > { %p1635_p13 = pnand %p1633_p1, %p1571_p8 }
  0x31   : > { %1464 = dma.hbm_to_vmem [thread:$0]  (!%p1938_p7), %s2199_s1, 256, %s311_s24, [#allocation11], %s2187_s20, %s2187_s20, %s2188_s23  }
  0x32   : > { %p1636_p0 = pneg %p1635_p13  ;;  %p1642_p6 = por %p1641_p3, %p1640_p2 }
  0x34   : > { %p1643_p9 = pnand %p1642_p6, %p1636_p0 }
  0x36   : > { %1646 = shalt.err (!%p1643_p9)
}
  0x37   : > { %s2200_s5 = sld [smem:[#allocation27_spill]]  ;;  %s1658_s25 = scalar_lea.vmem %s343_s29, 2048 }
  0x38   : > { %p1659_p10 = scmp.ne.s32.totalorder %s343_s29, %s1658_s25  ;;  %p1666_p1 = scmp.lt.s32.totalorder %s343_s29, %s343_s29 }
  0x39   : > { %p1667_p13 = scmp.lt.s32.totalorder %s1658_s25, %s1658_s25 }
  0x3a   : > { %p1661_p12 = pnand %p1659_p10, %p1571_p8 }
  0x3b   : > { %p1668_p0 = por %p1667_p13, %p1666_p1 }
  0x3c   : > { %p1662_p11 = pneg %p1661_p12 }
  0x3d   : > { %1467 = dma.hbm_to_vmem [thread:$0]  (!%p1938_p7), %s2200_s5, 2048, %s327_s27, [#allocation11], %s2187_s20, %s2187_s20, %s2188_s23  }
  0x3e   : > { %p1669_p2 = pnand %p1668_p0, %p1662_p11 }
  0x40   : > { %1672 = shalt.err (!%p1669_p2)
}
  0x41   : > { %s2201_s7 = sld [smem:[#allocation28_spill]]  ;;  %s45_s27 = sadd.s32 1, %s1803_s14 }
  0x42   : > { %s49_s22 = sadd.s32 1, %s1807_s15  ;;  %p47_p8 = scmp.ge.s32.totalorder %s45_s27, 5 }
  0x43   : > { %s126_s30 = sadd.s32 1, %s1791_s11  ;;  %p133_p3 = scmp.ne.s32.totalorder %s1791_s11, %s1787_s10 }
  0x44   : > { %p134_p6 = scmp.eq.s32.totalorder %s1811_s16, 0  ;;  %s2223_s27 = smov (%p47_p8, %s45_s27), 0 }
  0x45   : > { %2202 = sst [smem:[#allocation24_spill]] %s2223_s27  ;;  %s2225_s22 = smov (!%p47_p8, %s49_s22), %s1807_s15 }
  0x46   : > { %p1994_p9 = por %p134_p6, %p133_p3  ;;  %p1479_p10 = scmp.lt.s32.totalorder %s1811_s16, 10 }
  0x47   : > { %1470 = dma.hbm_to_vmem [thread:$0]  (!%p1938_p7), %s2201_s7, 2048, %s343_s29, [#allocation15], %s2187_s20, %s2187_s20, %s2188_s23  }
  0x48   : > { %p51_p12 = scmp.ge.s32.totalorder %s2225_s22, 2  ;;  %s359_s29 = sand.u32 1, %s1811_s16  }
  0x49   : > { %s361_s21 = sand.u32 1, %s1791_s11   ;;  %s1248_s26 = sshll.u32 %s1807_s15, 11 }
  0x4a   : > { %s2227_s22 = smov (%p51_p12, %s2225_s22), 0  ;;  %s1217_s25 = sshll.u32 %s361_s21, 7 }
  0x4b   : > { %s123_s28 = ssub.s32 %s1807_s15, %s2227_s22  ;;  %s369_s0 = scalar_lea.hbm %s2179_s3, %s1248_s26 }
  0x4c   : > { %p124_p7 = scmp.eq.s32.totalorder %s123_s28, 0  ;;  %s363_s1 = scalar_lea.vmem [#allocation12], %s1217_s25 }
  0x4d   : > { %s370_s5 = sshll.u32 %s363_s1, 4  ;;  %p2011_p11 = pnand %p1479_p10, %p1994_p9  ;;  %s371_s5 = int_to_ptr.vmem [resolvable:$true] %s370_s5 }
  0x4e   : > { %s2016_s27 = scalar_select %p124_p7, %s1791_s11, %s126_s30  }
  0x4f   : > { %s360_s14 = scalar_lea.sflag [#allocation8], %s359_s29  ;;  %p1675_p1 = pneg %p2011_p11 }
  0x50   : > { %s1686_s21 = scalar_lea.vmem %s371_s5, 2048  ;;  %s1821_s20 = smov [#allocation12]  }
  0x51   : > { %p1687_p13 = scmp.ne.s32.totalorder %s371_s5, %s1686_s21  ;;  %s1691_s23 = sshll.u32 %s1821_s20, 4  ;;  %s1692_s23 = int_to_ptr.vmem [resolvable:$false] %s1691_s23 }
  0x52   : > { %s1693_s1 = scalar_lea.vmem %s1692_s23, 4096  ;;  %p1694_p8 = scmp.lt.s32.totalorder %s371_s5, %s1692_s23 }
  0x53   : > { %p1689_p0 = pnand %p1687_p13, %p1675_p1  ;;  %p1695_p3 = scmp.lt.s32.totalorder %s1693_s1, %s1686_s21 }
  0x55   : > { %p1690_p2 = pneg %p1689_p0  ;;  %p1696_p6 = por %p1695_p3, %p1694_p8 }
  0x57   : > { %p1697_p9 = pnand %p1696_p6, %p1690_p2 }
  0x59   : > { %1700 = shalt.err (!%p1697_p9)
}
  0x5a   : > { %s2205_s30 = smov 8   ;;  %s2206_s24 = smov 128  }
  0x5b   : > { %1474 = dma.hbm_to_vmem [thread:$0]  (!%p2011_p11), %s369_s0, 2048, %s371_s5, %s360_s14, %s2206_s24, %s2206_s24, %s2205_s30  }
  0x5c   : > { %388 = sbr.rel (%p1930_p5) target bundleno = 1752 (0x6d8), region = 56  ;;  %p2207_p10 = scmp.eq.s32.totalorder (!%p1930_p5), %s1918_s17, 0 }
  0x61   : > { %1758 = dma.done.wait (%p2207_p10), [#allocation8], 128   ;;  %p2208_p12 = pmov %p2207_p10 }
  0x62   : > { %p2209_p7 = pmov %p2207_p10 }
  0x63   : > { %1760 = vsyncadd (%p2208_p12), [#allocation8], 4294967168 }
  0x64   : > { %1762 = dma.done.wait (%p2209_p7), [#allocation11], 256   ;;  %p2210_p1 = pmov %p2209_p7 }
  0x65   : > { %s398_s7 = sand.u32 1, %s1918_s17   ;;  %s400_s0 = sand.u32 1, %s1787_s10  }
  0x66   : > { %1764 = vsyncadd (%p2210_p1), [#allocation11], 4294967040  ;;  %s1223_s5 = sshll.u32 %s400_s0, 7  ;;  %s399_s14 = scalar_lea.sflag [#allocation8], %s398_s7 }
  0x67   : > { %s2037_s19 = scalar_lea.vmem [#allocation12], %s1223_s5 }
  0x68   : > { %1766 = dma.done.wait (%p1926_p4), %s399_s14, 2048  }
  0x69   : > { %1768 = vsyncadd (%p1926_p4), %s399_s14, 4294965248  ;;  %p2211_p5 = pmov %p2210_p1 }
  0x6a   : > { %p2212_p11 = pmov %p2210_p1 }
  0x6b   : > { %1770 = dma.done.wait (%p2211_p5), [#allocation11], 2048  }
  0x6c   : > { %1772 = vsyncadd (%p2212_p11), [#allocation11], 4294965248  ;;  %p2213_p13 = pmov %p2210_p1 }
  0x6d   : > { %p2214_p0 = pmov %p2210_p1 }
  0x6e   : > { %1774 = dma.done.wait (%p2213_p13), [#allocation15], 2048  }
  0x6f   : > { %1776 = vsyncadd (%p2214_p0), [#allocation15], 4294965248  ;;  %p444_p2 = scmp.lt.s32.totalorder %s1799_s13, 1  ;;  %p448_p8 = scmp.eq.s32.totalorder %s1795_s12, 0 }
  0x70   : > { %p1228_p4 = scmp.ne.s32.totalorder (%p448_p8), %s1799_s13, 0 }
  0x71   : > { %s2054_s29 = scalar_select %p444_p2, %s1799_s13, 1 }
  0x72   : > { %456 = sbr.rel (!%p448_p8) target bundleno = 154 (0x9a), region = 80 }
  0x73   : > { %s446_s26 = scalar_lea.vmem %s2180_s4, %s2054_s29 }
  0x77   : > { %460 = sbr.rel (%p1228_p4) target bundleno = 126 (0x7e), region = 84 }
  0x7c   : > { %v461_v0 = vld [vmem:[#allocation10] sm:$0xff]  ;;  %v462_v1 = vld [vmem:[#allocation10 + $0x8] sm:$0xff] }
  0x7d   : > { %463 = vst [vmem:[#allocation2] sm:$0xff] %v461_v0  ;;  %464 = vst [vmem:[#allocation2 + $0x8] sm:$0xff] %v462_v1 }
  0x7e PF:  {}
  0x84   : > { %v465_v2 = vld [vmem:[#allocation2] sm:$0xff]  ;;  %v466_v3 = vld [vmem:[#allocation2 + $0x8] sm:$0xff] }
  0x85   : > { %v467_v4 = vadd.f32 %v466_v3, %v465_v2 }
  0x87   : > { %v468_v5 = vrot.slane %v467_v4, 4 }
  0x89   : > { %v469_v6 = vadd.f32 %v468_v5, %v467_v4 }
  0x8b   : > { %v470_v7 = vrot.slane %v469_v6, 2 }
  0x8d   : > { %v471_v8 = vadd.f32 %v470_v7, %v469_v6 }
  0x8f   : > { %v472_v9 = vrot.slane %v471_v8, 1 }
  0x91   : > { %v473_v10 = vadd.f32 %v472_v9, %v471_v8 }
  0x93   : > { %v474_v11 = vmul.f32 0.0625, %v473_v10 }
  0x95   : > { %v475_v12 = vsub.f32 %v465_v2, %v474_v11  ;;  %v476_v13 = vsub.f32 %v466_v3, %v474_v11 }
  0x97   : > { %477 = vst [vmem:[#allocation4 + $0x8] sm:$0xff] %v475_v12  ;;  %478 = vst [vmem:[#allocation4] sm:$0xff] %v476_v13  ;;  %v479_v14 = vmul.f32 0.09090909, %v475_v12  ;;  %v480_v15 = vmul.f32 0.09090909, %v476_v13 }
  0x99   : > { %481 = vst [vmem:[#allocation3 + $0x8] sm:$0xff] %v479_v14  ;;  %482 = vst [vmem:[#allocation3] sm:$0xff] %v480_v15 }
  0x9a PF: > { %v483_v16 = vld [vmem:[#allocation7] sm:$0xf]  ;;  %v484_v17 = vld [vmem:[#allocation7 + $0x4] sm:$0xf]  ;;  %p487_p3 = scmp.lt.s32.totalorder %s1795_s12, 0  ;;  %s488_s28 = ssub.s32 0, %s1795_s12 }
  0x9b   : > { %s1229_s21 = smin.u32 %s1795_s12, %s488_s28 }
  0x9c   : > { %s490_s20 = sand.u32 1, %s1229_s21  }
  0x9d   : > { %s491_s23 = ssub.s32 0, %s490_s20 }
  0x9e   : > { %s2229_s23 = smov (!%p487_p3, %s491_s23), %s490_s20 }
  0x9f   : > { %p1231_p6 = scmp.lt.s32.totalorder %s2229_s23, 0  ;;  %s497_s1 = sadd.s32 2, %s2229_s23 }
  0xa1   : > { %s2231_s1 = smov (!%p1231_p6, %s497_s1), %s2229_s23 }
  0xa2   : > { %p1232_p9 = scmp.ne.s32.totalorder %s2231_s1, 0 }
  0xa4   : > { %502 = sbr.rel (%p1232_p9) target bundleno = 375 (0x177), region = 88 }
  0xa9   : > { %v509_v18 = vld [vmem:[#allocation4 + $0x8] sm:$0xff]  ;;  %v510_v19 = vld [vmem:[#allocation4] sm:$0xff]  ;;  %v1822_v20 = vmov 0.0   ;;  %vm1823_vm0 = vmmov 0   ;;  %v1233_v22 = vcombine.low %v483_v16, %v484_v17  ;;  %vm519_vm1 = vcmask 130048   ;;  %v574_v24 = vld [vmem:[#allocation3 + $0x8] sm:$0xff] }
  0xaa   : > { %1312 = vmatprep.subr.bf16.mxu0 %v1822_v20  ;;  %v511_v21 = vpack.c.bf16 %v510_v19, %v509_v18  ;;  %1314 = vmatprep.mubr.msk.bf16.mxu0 %vm1823_vm0, %v1822_v20  ;;  %v575_v28 = vld [vmem:[#allocation3] sm:$0xff] }
  0xac   : > { %1313 = vmatpush3.bf16.msra.mxu0 %v511_v21 }
  0xaf   : > { %1315 = vmatmul.mubr.msk.bf16.vlgmr.msra.gmra.mxu0 %vm519_vm1, %v1233_v22 }
 0x16f   : > { %v557_v23 = vpop.f32.mrf.mxu0 }
 0x170   : > { %v576_v26 = vadd.f32 %v574_v24, %v557_v23 }
 0x171   : > { %v1316_v25 = vpop.f32.mrf.mxu0 }
 0x172   : > { %579 = vst [vmem:[#allocation5] sm:$0xff] %v576_v26 }
 0x173   : > { %v560_v27 = vpop.f32.mrf.mxu0 }
 0x174   : > { %v577_v30 = vadd.f32 %v575_v28, %v560_v27 }
 0x175   : > { %v1317_v29 = vpop.f32.mrf.mxu0 }
 0x176   : > { %580 = vst [vmem:[#allocation5 + $0x8] sm:$0xff] %v577_v30 }
 0x177 PF: > { %p1235_p10 = scmp.ne.s32.totalorder %s2231_s1, 1 }
 0x179   : > { %584 = sbr.rel (%p1235_p10) target bundleno = 588 (0x24c), region = 100 }
 0x17e   : > { %v591_v31 = vld [vmem:[#allocation5] sm:$0xff]  ;;  %v592_v32 = vld [vmem:[#allocation5 + $0x8] sm:$0xff]  ;;  %v1824_v33 = vmov 0.0   ;;  %vm1825_vm2 = vmmov 0   ;;  %v1236_v35 = vcombine.low %v483_v16, %v484_v17  ;;  %vm601_vm3 = vcmask 130048  }
 0x17f   : > { %1318 = vmatprep.subr.bf16.mxu0 %v1824_v33  ;;  %v593_v34 = vpack.c.bf16 %v592_v32, %v591_v31  ;;  %1320 = vmatprep.mubr.msk.bf16.mxu0 %vm1825_vm2, %v1824_v33  ;;  %v656_v37 = vld [vmem:[#allocation3 + $0x8] sm:$0xff]  ;;  %v657_v41 = vld [vmem:[#allocation3] sm:$0xff] }
 0x181   : > { %1319 = vmatpush3.bf16.msra.mxu0 %v593_v34 }
 0x184   : > { %1321 = vmatmul.mubr.msk.bf16.vlgmr.msra.gmra.mxu0 %vm601_vm3, %v1236_v35 }
 0x244   : > { %v639_v36 = vpop.f32.mrf.mxu0 }
 0x245   : > { %v658_v39 = vadd.f32 %v656_v37, %v639_v36 }
 0x246   : > { %v1322_v38 = vpop.f32.mrf.mxu0 }
 0x247   : > { %661 = vst [vmem:[#allocation4 + $0x8] sm:$0xff] %v658_v39 }
 0x248   : > { %v642_v40 = vpop.f32.mrf.mxu0 }
 0x249   : > { %v659_v43 = vadd.f32 %v657_v41, %v642_v40 }
 0x24a   : > { %v1323_v42 = vpop.f32.mrf.mxu0 }
 0x24b   : > { %662 = vst [vmem:[#allocation4] sm:$0xff] %v659_v43 }
 0x24c PF: > { %p663_p12 = scmp.eq.s32.totalorder %s1795_s12, 4 }
 0x24d   : > { %v687_v44 = vld [vmem:[%s2037_s19 + $0x78] sm:$0xff] (%p663_p12)  ;;  %v686_v45 = vld [vmem:[%s2037_s19 + $0x70] sm:$0xff] (%p663_p12)  ;;  %v685_v46 = vld [vmem:[%s2037_s19 + $0x68] sm:$0xff] (%p663_p12) }
 0x24e   : > { %669 = sbr.rel (!%p663_p12) target bundleno = 822 (0x336), region = 112  ;;  %1324 = vmatprep.subr.mxu0 (%p663_p12), %v687_v44  ;;  %v684_v47 = vld [vmem:[%s2037_s19 + $0x60] sm:$0xff] (%p663_p12)  ;;  %v670_v48 = vld [vmem:[#allocation5] sm:$0xff] (%p663_p12)  ;;  %v682_v50 = vld [vmem:[%s2037_s19 + $0x50] sm:$0xff] (%p663_p12) }
 0x24f   : > { %1325 = vmatpush3.msra.mxu0 (%p663_p12), %v687_v44  ;;  %v683_v49 = vld [vmem:[%s2037_s19 + $0x58] sm:$0xff] (%p663_p12)  ;;  %1356 = vmatprep.mubr.f32.mxu0 (%p663_p12), %v670_v48  ;;  %v681_v51 = vld [vmem:[%s2037_s19 + $0x48] sm:$0xff] (%p663_p12)  ;;  %v680_v52 = vld [vmem:[%s2037_s19 + $0x40] sm:$0xff] (%p663_p12) }
 0x250   : > { %1326 = vmatprep.subr.mxu0 (%p663_p12), %v686_v45  ;;  %v679_v53 = vld [vmem:[%s2037_s19 + $0x38] sm:$0xff] (%p663_p12)  ;;  %v678_v54 = vld [vmem:[%s2037_s19 + $0x30] sm:$0xff] (%p663_p12)  ;;  %v677_v55 = vld [vmem:[%s2037_s19 + $0x28] sm:$0xff] (%p663_p12) }
 0x251   : > { %1327 = vmatpush3.msra.mxu0 (%p663_p12), %v686_v45  ;;  %v676_v56 = vld [vmem:[%s2037_s19 + $0x20] sm:$0xff] (%p663_p12)  ;;  %v675_v57 = vld [vmem:[%s2037_s19 + $0x18] sm:$0xff] (%p663_p12)  ;;  %v674_v58 = vld [vmem:[%s2037_s19 + $0x10] sm:$0xff] (%p663_p12) }
 0x252   : > { %1328 = vmatprep.subr.mxu0 (%p663_p12), %v685_v46  ;;  %v673_v59 = vld [vmem:[%s2037_s19 + $0x8] sm:$0xff] (%p663_p12)  ;;  %v672_v60 = vld [vmem:[%s2037_s19] sm:$0xff] (%p663_p12) }
 0x253   : > { %1329 = vmatpush3.msra.mxu0 %v685_v46  ;;  %v671_v61 = vld [vmem:[#allocation5 + $0x8] sm:$0xff]  ;;  %v1240_v62 = vld [vmem:[%s446_s26] ss:$0 sm:$0xff] }
 0x254   : > { %1330 = vmatprep.subr.mxu0 %v684_v47 }
 0x255   : > { %1331 = vmatpush3.msra.mxu0 %v684_v47 }
 0x256   : > { %1332 = vmatprep.subr.mxu0 %v683_v49 }
 0x257   : > { %1333 = vmatpush3.msra.mxu0 %v683_v49 }
 0x258   : > { %1334 = vmatprep.subr.mxu0 %v682_v50 }
 0x259   : > { %1335 = vmatpush3.msra.mxu0 %v682_v50 }
 0x25a   : > { %1336 = vmatprep.subr.mxu0 %v681_v51 }
 0x25b   : > { %1337 = vmatpush3.msra.mxu0 %v681_v51 }
 0x25c   : > { %1338 = vmatprep.subr.mxu0 %v680_v52 }
 0x25d   : > { %1339 = vmatpush3.msra.mxu0 %v680_v52 }
 0x25e   : > { %1340 = vmatprep.subr.mxu0 %v679_v53 }
 0x25f   : > { %1341 = vmatpush3.msra.mxu0 %v679_v53 }
 0x260   : > { %1342 = vmatprep.subr.mxu0 %v678_v54 }
 0x261   : > { %1343 = vmatpush3.msra.mxu0 %v678_v54 }
 0x262   : > { %1344 = vmatprep.subr.mxu0 %v677_v55 }
 0x263   : > { %1345 = vmatpush3.msra.mxu0 %v677_v55 }
 0x264   : > { %1346 = vmatprep.subr.mxu0 %v676_v56 }
 0x265   : > { %1347 = vmatpush3.msra.mxu0 %v676_v56 }
 0x266   : > { %1348 = vmatprep.subr.mxu0 %v675_v57 }
 0x267   : > { %1349 = vmatpush3.msra.mxu0 %v675_v57 }
 0x268   : > { %1350 = vmatprep.subr.mxu0 %v674_v58 }
 0x269   : > { %1351 = vmatpush3.msra.mxu0 %v674_v58 }
 0x26a   : > { %1352 = vmatprep.subr.mxu0 %v673_v59 }
 0x26b   : > { %1353 = vmatpush3.msra.mxu0 %v673_v59 }
 0x26c   : > { %1354 = vmatprep.subr.mxu0 %v672_v60 }
 0x26d   : > { %1355 = vmatpush3.msra.mxu0 %v672_v60 }
 0x26e   : > { %1357 = vmatmul.mubr.f32.vlgmr.msra.gmra.mxu0 %v671_v61 }
 0x32e   : > { %v1358_v63 = vpop.f32.mrf.mxu0 }
 0x32f   : > { %v767_v0 = vadd.f32 %v1358_v63, %v1240_v62 }
 0x330   : > { %v761_v1 = vpop.f32.mrf.mxu0 }
 0x331   : > { %v771_v2 = vmax.f32 %v767_v0, 0.0  ;;  %v762_v3 = vadd.f32 %v1240_v62, %v761_v1 }
 0x333   : > { %784 = vst [vmem:[#allocation2 + $0x8] sm:$0xff] %v771_v2  ;;  %v770_v4 = vmax.f32 %v762_v3, 0.0 }
 0x335   : > { %783 = vst [vmem:[#allocation2] sm:$0xff] %v770_v4 }
 0x336 PF: > { %p785_p7 = scmp.eq.s32.totalorder %s1799_s13, 1 }
 0x338   : > { %p786_p1 = pnand %p785_p7, %p663_p12 }
 0x33a   : > { %789 = sbr.rel (%p786_p1) target bundleno = 1737 (0x6c9), region = 116 }
 0x33f   : > { %v792_v5 = vld [vmem:[#allocation2 + $0x8] sm:$0xff]  ;;  %v1826_v6 = vmov 0.0   ;;  %v791_v7 = vld [vmem:[#allocation2] sm:$0xff]  ;;  %vm1827_vm4 = vmmov 0   ;;  %v882_v8 = vld [vmem:[#allocation13 + $0x78] sm:$0xff]  ;;  %vm793_vm5 = vcmask 130048   ;;  %v1054_v48 = vlaneseq }
 0x340   : > { %1359 = vmatprep.subr.mxu0 %v1826_v6  ;;  %1363 = vmatprep.mubr.msk.f32.mxu0 %vm1827_vm4, %v1826_v6  ;;  %v790_v9 = vld [vmem:[%s2178_s2] sm:$0x3]  ;;  %v881_v10 = vld [vmem:[#allocation13 + $0x70] sm:$0xff]  ;;  %v879_v12 = vld [vmem:[#allocation13 + $0x60] sm:$0xff]  ;;  %vm1058_vm7 = vcmask 1041408  }
 0x341   : > { %1360 = vmatpush3.msra.mxu0 %v792_v5  ;;  %1366 = vmatprep.subr.mxu1 %v1826_v6  ;;  %v880_v11 = vld [vmem:[#allocation13 + $0x68] sm:$0xff]  ;;  %v878_v13 = vld [vmem:[#allocation13 + $0x58] sm:$0xff]  ;;  %v877_v14 = vld [vmem:[#allocation13 + $0x50] sm:$0xff]  ;;  %v1055_v49 = vand.u32 127, %v1054_v48 }
 0x342   : > { %1361 = vmatprep.subr.mxu0 %v1826_v6  ;;  %1367 = vmatpush3.msra.mxu1 %v882_v8  ;;  %v876_v15 = vld [vmem:[#allocation13 + $0x48] sm:$0xff]  ;;  %v875_v16 = vld [vmem:[#allocation13 + $0x40] sm:$0xff]  ;;  %v874_v17 = vld [vmem:[#allocation13 + $0x38] sm:$0xff] }
 0x343   : > { %1362 = vmatpush3.msra.mxu0 %v791_v7  ;;  %1368 = vmatprep.subr.mxu1 %v1826_v6  ;;  %v873_v18 = vld [vmem:[#allocation13 + $0x30] sm:$0xff]  ;;  %v872_v19 = vld [vmem:[#allocation13 + $0x28] sm:$0xff]  ;;  %v871_v20 = vld [vmem:[#allocation13 + $0x20] sm:$0xff]  ;;  %vm1056_vm6 = vcmp.lt.s32.totalorder %v1055_v49, 4 }
 0x344   : > { %1364 = vmatmul.mubr.msk.f32.vlgmr.msra.gmra.mxu0 %vm793_vm5, %v790_v9  ;;  %1369 = vmatpush3.msra.mxu1 %v881_v10  ;;  %v870_v21 = vld [vmem:[#allocation13 + $0x18] sm:$0xff]  ;;  %v869_v22 = vld [vmem:[#allocation13 + $0x10] sm:$0xff]  ;;  %v868_v23 = vld [vmem:[#allocation13 + $0x8] sm:$0xff] }
 0x345   : > { %1370 = vmatprep.subr.mxu1 %v1826_v6  ;;  %1398 = vmatprep.mubr.msk.f32.mxu1 %vm1827_vm4, %v1826_v6  ;;  %v867_v24 = vld [vmem:[#allocation13] sm:$0xff]  ;;  %v976_v25 = vld [vmem:[#allocation14 + $0x78] sm:$0xff]  ;;  %v975_v26 = vld [vmem:[#allocation14 + $0x70] sm:$0xff] }
 0x346   : > { %1371 = vmatpush3.msra.mxu1 %v880_v11  ;;  %1401 = vmatprep.subr.mxu0 %v1826_v6  ;;  %v974_v27 = vld [vmem:[#allocation14 + $0x68] sm:$0xff]  ;;  %v973_v28 = vld [vmem:[#allocation14 + $0x60] sm:$0xff]  ;;  %v972_v29 = vld [vmem:[#allocation14 + $0x58] sm:$0xff] }
 0x347   : > { %1372 = vmatprep.subr.mxu1 %v1826_v6  ;;  %1433 = vmatprep.mubr.msk.f32.mxu0 %vm1827_vm4, %v1826_v6  ;;  %v971_v30 = vld [vmem:[#allocation14 + $0x50] sm:$0xff]  ;;  %v970_v31 = vld [vmem:[#allocation14 + $0x48] sm:$0xff]  ;;  %v969_v32 = vld [vmem:[#allocation14 + $0x40] sm:$0xff] }
 0x348   : > { %1373 = vmatpush3.msra.mxu1 %v879_v12  ;;  %1402 = vmatpush3.msra.mxu0 %v976_v25  ;;  %v968_v33 = vld [vmem:[#allocation14 + $0x38] sm:$0xff]  ;;  %v967_v34 = vld [vmem:[#allocation14 + $0x30] sm:$0xff]  ;;  %v966_v35 = vld [vmem:[#allocation14 + $0x28] sm:$0xff] }
 0x349   : > { %1374 = vmatprep.subr.mxu1 %v1826_v6  ;;  %1403 = vmatprep.subr.mxu0 %v1826_v6  ;;  %v965_v36 = vld [vmem:[#allocation14 + $0x20] sm:$0xff]  ;;  %v964_v37 = vld [vmem:[#allocation14 + $0x18] sm:$0xff]  ;;  %v963_v40 = vld [vmem:[#allocation14 + $0x10] sm:$0xff] }
 0x34a   : > { %1375 = vmatpush3.msra.mxu1 %v878_v13  ;;  %1404 = vmatpush3.msra.mxu0 %v975_v26  ;;  %v962_v41 = vld [vmem:[#allocation14 + $0x8] sm:$0xff]  ;;  %v961_v42 = vld [vmem:[#allocation14] sm:$0xff] }
 0x34b   : > { %1376 = vmatprep.subr.mxu1 %v1826_v6  ;;  %1405 = vmatprep.subr.mxu0 %v1826_v6  ;;  %v1242_v43 = vld [vmem:[%s2182_s6] ss:$0 sm:$0xff] }
 0x34c   : > { %1377 = vmatpush3.msra.mxu1 %v877_v14  ;;  %1406 = vmatpush3.msra.mxu0 %v974_v27  ;;  %v1243_v50 = vld [vmem:[%s2184_s8] ss:$0 sm:$0xff] }
 0x34d   : > { %1378 = vmatprep.subr.mxu1 %v1826_v6  ;;  %1407 = vmatprep.subr.mxu0 %v1826_v6 }
 0x34e   : > { %1379 = vmatpush3.msra.mxu1 %v876_v15  ;;  %1408 = vmatpush3.msra.mxu0 %v973_v28 }
 0x34f   : > { %1380 = vmatprep.subr.mxu1 %v1826_v6  ;;  %1409 = vmatprep.subr.mxu0 %v1826_v6 }
 0x350   : > { %1381 = vmatpush3.msra.mxu1 %v875_v16  ;;  %1410 = vmatpush3.msra.mxu0 %v972_v29 }
 0x351   : > { %1382 = vmatprep.subr.mxu1 %v1826_v6  ;;  %1411 = vmatprep.subr.mxu0 %v1826_v6 }
 0x352   : > { %1383 = vmatpush3.msra.mxu1 %v874_v17  ;;  %1412 = vmatpush3.msra.mxu0 %v971_v30 }
 0x353   : > { %1384 = vmatprep.subr.mxu1 %v1826_v6  ;;  %1413 = vmatprep.subr.mxu0 %v1826_v6 }
 0x354   : > { %1385 = vmatpush3.msra.mxu1 %v873_v18  ;;  %1414 = vmatpush3.msra.mxu0 %v970_v31 }
 0x355   : > { %1386 = vmatprep.subr.mxu1 %v1826_v6  ;;  %1415 = vmatprep.subr.mxu0 %v1826_v6 }
 0x356   : > { %1387 = vmatpush3.msra.mxu1 %v872_v19  ;;  %1416 = vmatpush3.msra.mxu0 %v969_v32 }
 0x357   : > { %1388 = vmatprep.subr.mxu1 %v1826_v6  ;;  %1417 = vmatprep.subr.mxu0 %v1826_v6 }
 0x358   : > { %1389 = vmatpush3.msra.mxu1 %v871_v20  ;;  %1418 = vmatpush3.msra.mxu0 %v968_v33 }
 0x359   : > { %1390 = vmatprep.subr.mxu1 %v1826_v6  ;;  %1419 = vmatprep.subr.mxu0 %v1826_v6 }
 0x35a   : > { %1391 = vmatpush3.msra.mxu1 %v870_v21  ;;  %1420 = vmatpush3.msra.mxu0 %v967_v34 }
 0x35b   : > { %1392 = vmatprep.subr.mxu1 %v1826_v6  ;;  %1421 = vmatprep.subr.mxu0 %v1826_v6 }
 0x35c   : > { %1393 = vmatpush3.msra.mxu1 %v869_v22  ;;  %1422 = vmatpush3.msra.mxu0 %v966_v35 }
 0x35d   : > { %1394 = vmatprep.subr.mxu1 %v1826_v6  ;;  %1423 = vmatprep.subr.mxu0 %v1826_v6 }
 0x35e   : > { %1395 = vmatpush3.msra.mxu1 %v868_v23  ;;  %1424 = vmatpush3.msra.mxu0 %v965_v36 }
 0x35f   : > { %1396 = vmatprep.subr.mxu1 %v1826_v6  ;;  %1425 = vmatprep.subr.mxu0 %v1826_v6 }
 0x360   : > { %1397 = vmatpush3.msra.mxu1 %v867_v24  ;;  %1426 = vmatpush3.msra.mxu0 %v964_v37 }
 0x361   : > { %1427 = vmatprep.subr.mxu0 %v1826_v6 }
 0x362   : > { %1428 = vmatpush3.msra.mxu0 %v963_v40 }
 0x363   : > { %1429 = vmatprep.subr.mxu0 %v1826_v6 }
 0x364   : > { %1430 = vmatpush3.msra.mxu0 %v962_v41 }
 0x365   : > { %1431 = vmatprep.subr.mxu0 %v1826_v6 }
 0x366   : > { %1432 = vmatpush3.msra.mxu0 %v961_v42 }
 0x404   : > { %v863_v38 = vpop.f32.mrf.mxu0 }
 0x405   : > { %1399 = vmatmul.mubr.f32.vlgmr.msra.gmra.mxu1 %v863_v38 }
 0x406   : > { %v1365_v39 = vpop.f32.mrf.mxu0 }
 0x4c5   : > { %v956_v44 = vpop.f32.mrf.mxu1 }
 0x4c6   : > { %v957_v45 = vadd.f32 %v1242_v43, %v956_v44 }
 0x4c7   : > { %v1400_v46 = vpop.f32.mrf.mxu1 }
 0x4c8   : > { %v960_v47 = vmax.f32 %v957_v45, 0.0 }
 0x4ca   : > { %1434 = vmatmul.mubr.f32.vlgmr.msra.gmra.mxu0 %v960_v47 }
 0x58a   : > { %v1050_v51 = vpop.f32.mrf.mxu0 }
 0x58b   : > { %v1051_v52 = vadd.f32 %v1243_v50, %v1050_v51 }
 0x58c   : > { %v1435_v53 = vpop.f32.mrf.mxu0 }
 0x58d   : > { %v1057_v54 = vsel %vm1056_vm6, %v1051_v52, -1e+30 }
 0x58e   : > { %v1059_v55 = vsel %vm1058_vm7, %v1057_v54, -inf }
 0x58f   : > { %1060 = vmax.xlane.f32.xlu0 %v1059_v55 }
 0x618   : > { %v1061_v56 = vpop.xlane.xlu0 %1060 }
 0x619   : > { %v1062_v57 = vsub.f32 %v1057_v54, %v1061_v56 }
 0x61b   : > { %v1063_v58 = vmul.f32 1.442695, %v1062_v57 }
 0x61d   : > { %1565 = vpow2.f32 %v1063_v58 }
 0x62a   : > { %v1566_v59 = vpop.eup %1565 }
 0x62b   : > { %v1065_v60 = vsel %vm1058_vm7, %v1566_v59, 0.0 }
 0x62c   : > { %1066 = vadd.xlane.f32.xlu0 %v1065_v60 }
 0x6b5   : > { %v1067_v61 = vpop.xlane.xlu0 %1066 }
 0x6b6   : > { %1567 = vlog2.f32 %v1067_v61 }
 0x6c3   : > { %v1568_v62 = vpop.eup %1567 }
 0x6c4   : > { %v1069_v63 = vmul.f32 0.6931472, %v1568_v62 }
 0x6c6   : > { %v1070_v0 = vsub.f32 %v1062_v57, %v1069_v63 }
 0x6c8   : > { %1071 = vst [vmem:[#allocation16] sm:$0x3] %v1070_v0 }
 0x6c9 PF: > { %p1484_p5 = scmp.eq.s32.totalorder %s1918_s17, 9  ;;  %s1828_s19 = smov [#allocation16]  }
 0x6ca   : > { %s1079_s29 = sshll.u32 %s1828_s19, 4  ;;  %s1080_s29 = int_to_ptr.vmem [resolvable:$true] %s1079_s29 }
 0x6cb   : > { %s1701_s18 = scalar_lea.vmem %s1080_s29, 32  ;;  %p1708_p2 = scmp.lt.s32.totalorder %s1080_s29, %s1080_s29 }
 0x6cc   : > { %p1702_p11 = scmp.ne.s32.totalorder %s1080_s29, %s1701_s18  ;;  %p1709_p8 = scmp.lt.s32.totalorder %s1701_s18, %s1701_s18 }
 0x6ce   : > { %p1703_p13 = pnand %p1702_p11, %p1484_p5  ;;  %p1710_p4 = por %p1709_p8, %p1708_p2 }
 0x6d0   : > { %p1704_p0 = pneg %p1703_p13 }
 0x6d2   : > { %p1711_p3 = pnand %p1710_p4, %p1704_p0 }
 0x6d4   : > { %1714 = shalt.err (!%p1711_p3)
}
 0x6d5   : > { %1455 = dma.vmem_to_hbm [thread:$0]  (%p1484_p5), %s1080_s29, 32, %s2185_s9, [#allocation9]  }
 0x6d6   : > { %1778 = dma.done.wait (%p1484_p5), [#allocation9], 32  }
 0x6d7   : > { %1780 = vsyncadd (%p1484_p5), [#allocation9], 4294967264 }
 0x6d8 PF: > { %s23_s16 = sadd.s32 1, %s1811_s16   ;;  %s2215_s12 = sld [smem:[#allocation23_spill]] }
 0x6d9   : > { %p20_p6 = scmp.ge.s32.totalorder %s23_s16, 12   ;;  %s2216_s14 = sld [smem:[#allocation24_spill]] }
 0x6da   : > { %s2217_s30 = smov %s1787_s10  ;;  %s2218_s10 = smov %s1791_s11 }
 0x6db   : > { %s2219_s11 = smov %s2016_s27  ;;  %s2220_s13 = smov %s1807_s15 }
 0x6dc   : > { %s2221_s15 = smov %s2227_s22  ;;  %22 = sbr.rel (!%p20_p6) target bundleno = 12 (0xc), region = 158 }
 0x6e1   :  { %1092 = vsyncpa [#allocation8], 1 }
 0x6e2   :  { %1094 = vsyncpa [#allocation8 + $0x1], 1 }
 0x6e3   :  { %1095 = vsyncpa [#allocation11], 1 }
 0x6e4   :  { %1096 = vsyncpa [#allocation15], 1 }
 0x6e5   :  { %1097 = vsyncpa [#allocation9], 1 }
 0x6e6   :  { %1099 = vsyncpa [#allocation9 + $0x1], 1 }

</bundles_post_ra>
